<compile_context>
chip_gen: v5e
topology: v5e:2x2
jax: 0.10.0
libtpu: 0.0.40
codegen_flags: <defaults>
</compile_context>

<pallas_src>
import functools

import jax
import jax.numpy as jnp
from jax.experimental import pallas as pl
from jax.experimental.pallas import tpu as pltpu


def adapter_kernel(x_ref, w1t_ref, w2t_ref, o_ref):
    # x_ref:   (tm, c_in)        activation dtype (f32 or bf16)
    # w1t_ref: (c_in, hidden)    bf16, resident (W1^T, zero-padded hidden)
    # w2t_ref: (hidden, c_in)    bf16, resident (W2^T, zero-padded hidden)
    # o_ref:   (tm, c_in)        output dtype
    x = x_ref[...].astype(w1t_ref.dtype)              # bf16 operands for the MXU
    h = jnp.dot(x, w1t_ref[...], preferred_element_type=jnp.float32)
    h = jnp.maximum(h, 0.0)                           # ReLU (f32, VPU)
    y = jnp.dot(h.astype(w2t_ref.dtype), w2t_ref[...],
                preferred_element_type=jnp.float32)
    y = jnp.maximum(y, 0.0)
    o_ref[...] = y.astype(o_ref.dtype)                # single down-cast store


def _round_up(a, b):
    return ((a + b - 1) // b) * b


def _physical_vmem_bytes():
    """Per-core VMEM capacity; conservative 64 MiB fallback (v7x per-TC)."""
    try:
        cap = int(pltpu.get_tpu_info().vmem_capacity_bytes)
        if cap > 0:
            return cap
    except Exception:
        pass
    return 64 << 20


def prepare_adapter_weights(w1, w2, compute_dtype=jnp.bfloat16):
    """One-time weight prep (do this at init, not per call).

    w1 : (hidden, c_in)  fc1 weight, PyTorch nn.Linear layout (out, in)
    w2 : (c_in, hidden)  fc2 weight, PyTorch nn.Linear layout (out, in)
    Returns (w1t, w2t) = (c_in, hidden_pad) / (hidden_pad, c_in), bf16,
    with hidden zero-padded to a multiple of 128 (lane-dense; the zero
    columns/rows contribute nothing, so numerics are unchanged).
    """
    hidden, c_in = w1.shape
    assert w2.shape == (c_in, hidden)
    w1t = w1.T.astype(compute_dtype)   # (c_in, hidden)
    w2t = w2.T.astype(compute_dtype)   # (hidden, c_in)
    hidden_pad = _round_up(hidden, 128)
    if hidden_pad != hidden:
        w1t = jnp.pad(w1t, ((0, 0), (0, hidden_pad - hidden)))
        w2t = jnp.pad(w2t, ((0, hidden_pad - hidden), (0, 0)))
    return w1t, w2t


@functools.partial(jax.jit, static_argnames=("tm", "out_dtype"))
def adapter_forward(x, w1t, w2t, *, tm=1024, out_dtype=None):
    """Adapter forward.

    x   : (..., c_in)           activations (any leading dims; f32 or bf16)
    w1t : (c_in, hidden_pad)    from prepare_adapter_weights
    w2t : (hidden_pad, c_in)    from prepare_adapter_weights
    out_dtype : output dtype (default: x.dtype). Pass jnp.bfloat16 to halve
                the output HBM stream when downstream accepts bf16.
    """
    orig_shape = x.shape
    c_in = orig_shape[-1]
    hidden = w1t.shape[1]
    assert w1t.shape == (c_in, hidden) and w2t.shape == (hidden, c_in)
    out_dtype = x.dtype if out_dtype is None else jnp.dtype(out_dtype)

    x2d = x.reshape(-1, c_in)          # row-major view, no HBM copy
    M = x2d.shape[0]
    in_sz = jnp.dtype(x.dtype).itemsize
    out_sz = jnp.dtype(out_dtype).itemsize

    # ---- row-tile selection -------------------------------------------------
    tm_eff = max(16, min(_round_up(tm, 16), _round_up(M, 16)))
    # Keep >= 4 grid steps so dimension_semantics=("parallel",) actually shards
    # rows across v7x's 2 TensorCores (no effect on v5e/v6e).
    tm_eff = min(tm_eff, max(16, _round_up(pl.cdiv(M, 4), 16)))

    vmem_cap = _physical_vmem_bytes()
    ws_cap = int(vmem_cap * 0.45)      # working-set cap, ~2x headroom for Mosaic scratch

    def vmem_budget(t):
        return (2 * t * c_in * (in_sz + out_sz)   # x + out tiles, double-buffered
                + 2 * c_in * hidden * 2           # resident bf16 weights (1 buffer each)
                + t * (hidden + c_in) * 4)        # f32 intermediates h / y

    while tm_eff > 16 and vmem_budget(tm_eff) > ws_cap:
        tm_eff = _round_up(tm_eff // 2, 16)

    vmem_limit_bytes = int(max(32 << 20,
                               min(2 * vmem_budget(tm_eff), int(vmem_cap * 0.75))))

    grid = (pl.cdiv(M, tm_eff),)       # partial last block handled by Pallas
                                       # (OOB rows read garbage, never written)

    # TODO(synk): for production c_in should be a multiple of 128 (lane-dense
    # stores); BLIP dims (512/768/1024) already are, tiny test dims are not.
    out = pl.pallas_call(
        adapter_kernel,
        out_shape=jax.ShapeDtypeStruct((M, c_in), out_dtype),
        grid_spec=pltpu.PrefetchScalarGridSpec(
            num_scalar_prefetch=0,
            grid=grid,
            in_specs=[
                pl.BlockSpec((tm_eff, c_in), lambda i: (i, 0)),    # streaming x
                pl.BlockSpec((c_in, hidden), lambda i: (0, 0),     # resident W1^T
                             pipeline_mode=pl.Buffered(1)),
                pl.BlockSpec((hidden, c_in), lambda i: (0, 0),     # resident W2^T
                             pipeline_mode=pl.Buffered(1)),
            ],
            out_specs=pl.BlockSpec((tm_eff, c_in), lambda i: (i, 0)),
        ),
        compiler_params=pltpu.CompilerParams(
            dimension_semantics=("parallel",),
            vmem_limit_bytes=vmem_limit_bytes),
    )(x2d, w1t, w2t)

    return out.reshape(orig_shape)


def adapter_ref_f32(x, w1, w2):
    """Pure-f32 PyTorch-semantics reference."""
    h = jnp.maximum(x @ w1.T, 0.0)
    return jnp.maximum(h @ w2.T, 0.0)


def adapter_ref_bf16(x, w1, w2, compute_dtype=jnp.bfloat16):
    """Reference matching the kernel's bf16-operand / f32-accumulate numerics."""
    w1t = w1.T.astype(compute_dtype)
    w2t = w2.T.astype(compute_dtype)
    h = jnp.dot(x.astype(compute_dtype), w1t, preferred_element_type=jnp.float32)
    h = jnp.maximum(h, 0.0)
    y = jnp.dot(h.astype(compute_dtype), w2t, preferred_element_type=jnp.float32)
    return jnp.maximum(y, 0.0).astype(x.dtype)


if __name__ == "__main__":
    # Small shapes consistent with the module: c_in=32, reduction=4 -> hidden=8.
    # 3-D input (batch, seq, c_in) with batch*seq = 20 exercises the ragged
    # last-block (cdiv grid) path and the reshape handling.
    batch, seq, c_in, reduction = 2, 10, 32, 4
    hidden = c_in // reduction

    key = jax.random.PRNGKey(0)
    kx, k1, k2 = jax.random.split(key, 3)

    x = jax.random.normal(kx, (batch, seq, c_in), dtype=jnp.float32)
    # nn.Linear weight shapes: (out_features, in_features).
    w1 = jax.random.normal(k1, (hidden, c_in), dtype=jnp.float32) * (1.0 / c_in ** 0.5)
    w2 = jax.random.normal(k2, (c_in, hidden), dtype=jnp.float32) * (1.0 / hidden ** 0.5)

    # One-time weight prep (transpose + bf16 cast + lane-dense hidden padding).
    w1t, w2t = prepare_adapter_weights(w1, w2)

    out = adapter_forward(x, w1t, w2t)
    out = jax.block_until_ready(out)
    assert out.shape == x.shape and out.dtype == x.dtype

    # Tight check against the bf16-matched reference (same numerics).
    ref_matched = adapter_ref_bf16(x, w1, w2)
    assert jnp.allclose(out, ref_matched, atol=2e-3, rtol=2e-3), (
        float(jnp.max(jnp.abs(out - ref_matched))))

    # Loose check against the pure-f32 PyTorch semantics (bf16 operand drift).
    ref_f32 = adapter_ref_f32(x, w1, w2)
    assert jnp.allclose(out, ref_f32, atol=1e-1, rtol=1e-1), (
        float(jnp.max(jnp.abs(out - ref_f32))))

    print("KERNEL_OK")
</pallas_src>

<mosaic_0001>
module attributes {stable_mosaic.version = 11 : i64} {
  func.func @adapter_kernel(%arg0: i32, %arg1: memref<16x32xf32, #tpu.memory_space<vmem>>, %arg2: memref<32x128xbf16, #tpu.memory_space<vmem>>, %arg3: memref<128x32xbf16, #tpu.memory_space<vmem>>, %arg4: memref<16x32xf32, #tpu.memory_space<vmem>>) attributes {dimension_semantics = [#tpu.dimension_semantics<parallel>], iteration_bounds = array<i64: 2>, scalar_prefetch = 0 : i64, scratch_operands = 0 : i64, tpu.core_type = #tpu.core_type<tc>, window_params = [{transform_indices = @transform_0, window_bounds = array<i64: 16, 32>}, {pipeline_mode = #tpu.pipeline_mode<synchronous>, transform_indices = @transform_1, window_bounds = array<i64: 32, 128>}, {pipeline_mode = #tpu.pipeline_mode<synchronous>, transform_indices = @transform_2, window_bounds = array<i64: 128, 32>}, {transform_indices = @transform_3, window_bounds = array<i64: 16, 32>}]} {
    %c0 = arith.constant 0 : index
    %c0_0 = arith.constant 0 : index
    %0 = vector.load %arg1[%c0, %c0_0] : memref<16x32xf32, #tpu.memory_space<vmem>>, vector<16x32xf32>
    %1 = arith.truncf %0 : vector<16x32xf32> to vector<16x32xbf16>
    %c0_1 = arith.constant 0 : index
    %c0_2 = arith.constant 0 : index
    %2 = vector.load %arg2[%c0_1, %c0_2] : memref<32x128xbf16, #tpu.memory_space<vmem>>, vector<32x128xbf16>
    %cst = arith.constant dense<0.000000e+00> : vector<16x128xf32>
    %3 = tpu.matmul %1, %2, %cst {dimension_numbers = #tpu.dot_dimension_numbers<[1], [0], [0], [1], [0, 0, 1, 1], [], []>} : vector<16x32xbf16>, vector<32x128xbf16>, vector<16x128xf32> -> vector<16x128xf32>
    %cst_3 = arith.constant 0.000000e+00 : f32
    %4 = vector.broadcast %cst_3 : f32 to vector<16x128xf32>
    %5 = arith.maximumf %3, %4 : vector<16x128xf32>
    %6 = arith.truncf %5 : vector<16x128xf32> to vector<16x128xbf16>
    %c0_4 = arith.constant 0 : index
    %c0_5 = arith.constant 0 : index
    %7 = vector.load %arg3[%c0_4, %c0_5] : memref<128x32xbf16, #tpu.memory_space<vmem>>, vector<128x32xbf16>
    %cst_6 = arith.constant dense<0.000000e+00> : vector<16x32xf32>
    %8 = tpu.matmul %6, %7, %cst_6 {dimension_numbers = #tpu.dot_dimension_numbers<[1], [0], [0], [1], [0, 0, 1, 1], [], []>} : vector<16x128xbf16>, vector<128x32xbf16>, vector<16x32xf32> -> vector<16x32xf32>
    %cst_7 = arith.constant 0.000000e+00 : f32
    %9 = vector.broadcast %cst_7 : f32 to vector<16x32xf32>
    %10 = arith.maximumf %8, %9 : vector<16x32xf32>
    %c0_8 = arith.constant 0 : index
    %c0_9 = arith.constant 0 : index
    %11 = vector.load %arg4[%c0_8, %c0_9] : memref<16x32xf32, #tpu.memory_space<vmem>>, vector<16x32xf32>
    tpu.vector_store %arg4[%c0_8, %c0_9], %10 {strides = array<i32>} : memref<16x32xf32, #tpu.memory_space<vmem>>, vector<16x32xf32>,
    return
  }
  func.func @transform_0(%arg0: i32) -> (i32, i32) {
    %c0_i32 = arith.constant 0 : i32
    %c0_i32_0 = arith.constant 0 : i32
    return %arg0, %c0_i32 : i32, i32
  }
  func.func @transform_1(%arg0: i32) -> (i32, i32) {
    %c0_i32 = arith.constant 0 : i32
    %c0_i32_0 = arith.constant 0 : i32
    %c0_i32_1 = arith.constant 0 : i32
    return %c0_i32, %c0_i32_0 : i32, i32
  }
  func.func @transform_2(%arg0: i32) -> (i32, i32) {
    %c0_i32 = arith.constant 0 : i32
    %c0_i32_0 = arith.constant 0 : i32
    %c0_i32_1 = arith.constant 0 : i32
    return %c0_i32, %c0_i32_0 : i32, i32
  }
  func.func @transform_3(%arg0: i32) -> (i32, i32) {
    %c0_i32 = arith.constant 0 : i32
    %c0_i32_0 = arith.constant 0 : i32
    return %arg0, %c0_i32 : i32, i32
  }
}

</mosaic_0001>

<bundles_post_ra>
// kernel: adapter_forward.1
= control target key start
LH: loop header
LB: loop body
LE: loop exit
PB: predicated region body
PF: predicated region fallthrough
CT: control target
= control target key end

     0   :  { %s809_s12 = smov 0   ;;  %s811_s13 = smov 0   ;;  %s925_s0 = inlined_call_operand.vmem [shape: f32[20,32], index: 0, kind: input, shape index: {}]   ;;  %s926_s1 = inlined_call_operand.vmem [shape: bf16[32,128], index: 1, kind: input, shape index: {}]   ;;  %s927_s2 = inlined_call_operand.vmem [shape: bf16[128,32], index: 2, kind: input, shape index: {}]   ;;  %s928_s3 = inlined_call_operand.vmem [shape: f32[20,32], index: 3, kind: output, shape index: {}]  }
   0x1   :  { %s813_s14 = smov 0  }
   0x2 LB: > { %s822_s15 = sadd.s32 4294967295, %s755_s14   ;;  %s824_s16 = sadd.s32 1, %s755_s14   ;;  %s755_s14 = sphi %s813_s14, %s932_s14   ;;  %s751_s13 = sphi %s811_s13, %s931_s13   ;;  %s747_s12 = sphi %s809_s12, %s930_s12  }
   0x3   : > { %s85_s17 = ssub.s32 %s755_s14, %s824_s16  ;;  %s88_s18 = sadd.s32 1, %s751_s13 }
   0x4   : > { %p86_p0 = scmp.eq.s32.totalorder %s85_s17, 0  ;;  %p98_p1 = scmp.ne.s32.totalorder %s751_s13, %s747_s12 }
   0x5   : > { %p99_p2 = scmp.eq.s32.totalorder %s822_s15, 1  ;;  %p538_p3 = scmp.ge.s32.totalorder %s755_s14, 1 }
   0x6   : > { %s832_s19 = scalar_select %p86_p0, %s751_s13, %s88_s18  }
   0x7   : > { %p834_p4 = por %p99_p2, %p98_p1  ;;  %p146_p5 = scmp.lt.s32.totalorder %s755_s14, 3 }
   0x9   : > { %p147_p6 = pnand %p538_p3, %p146_p5 }
   0xa   : > { %s842_s23 = sshll.u32 (!%p147_p6), %s822_s15, 1  ;;  %s170_s27 = sand.u32 (!%p147_p6), 1, %s747_s12  }
   0xb   : > { %150 = sbr.rel (%p147_p6) target bundleno = 338 (0x152), region = 32  ;;  %p178_p7 = scmp.lt.s32.totalorder (!%p147_p6), %s842_s23, 2 }
   0xc   : > { %s539_s28 = sshll.u32 (!%p147_p6), %s170_s27, 4 }
   0xd   : > { %s878_s29 = scalar_lea.vmem (!%p147_p6), [#allocation2], %s539_s28  }
  0x10   : > { %v601_v0 = vld [vmem:[%s926_s1 + $0x8] sm:$0xff]  ;;  %v609_v1 = vld [vmem:[%s927_s2 + $0x38] sm:$0xff]  ;;  %v600_v2 = vld [vmem:[%s926_s1] sm:$0xff]  ;;  %s179_s30 = scalar_select %p178_p7, %s842_s23, 2  ;;  %vm212_vm0 = vcmask 261120  }
  0x11   : > { %222 = vmatpush.bf16.msra.mxu0 %v601_v0  ;;  %297 = vmatpush.bf16.msra.mxu1 %v609_v1  ;;  %v608_v3 = vld [vmem:[%s927_s2 + $0x30] sm:$0xff]  ;;  %v607_v4 = vld [vmem:[%s927_s2 + $0x28] sm:$0xff]  ;;  %v606_v8 = vld [vmem:[%s927_s2 + $0x20] sm:$0xff]  ;;  %s610_s12 = sshll.u32 (%p834_p4), %s822_s15, 4 }
  0x12   : > { %s541_s4 = sshll.u32 %s179_s30, 3  ;;  %v605_v9 = vld [vmem:[%s927_s2 + $0x18] sm:$0xff]  ;;  %v604_v10 = vld [vmem:[%s927_s2 + $0x10] sm:$0xff]  ;;  %v603_v11 = vld [vmem:[%s927_s2 + $0x8] sm:$0xff]  ;;  %s323_s30 = ssub.s32 (%p834_p4), 3, %s842_s23 }
  0x13   : > { %s181_s7 = scalar_lea.vmem %s925_s0, %s541_s4  ;;  %v602_v12 = vld [vmem:[%s927_s2] sm:$0xff]  ;;  %p324_p8 = scmp.lt.s32.totalorder (%p834_p4), %s323_s30, 2 }
  0x14   : > { %v193_v5 = vld [vmem:[%s181_s7] sm:$0xff]  ;;  %v194_v6 = vld [vmem:[%s181_s7 + $0x8] sm:$0xff]  ;;  %s891_s6 = scalar_lea.vmem (%p834_p4), %s928_s3, %s610_s12  }
  0x15   : > { %223 = vmatpush.bf16.msra.mxu0 %v600_v2  ;;  %298 = vmatpush.bf16.msra.mxu1 %v608_v3  ;;  %v195_v7 = vpack.c.bf16 %v194_v6, %v193_v5 }
  0x18   : > { %550 = vmatmul.msk.bf16.vlgmr.msra.gmra.mxu0 %vm212_vm0, %v195_v7 }
  0x19   : > { %299 = vmatpush.bf16.msra.mxu1 %v607_v4 }
  0x1d   : > { %300 = vmatpush.bf16.msra.mxu1 %v606_v8 }
  0x21   : > { %301 = vmatpush.bf16.msra.mxu1 %v605_v9 }
  0x25   : > { %302 = vmatpush.bf16.msra.mxu1 %v604_v10 }
  0x29   : > { %303 = vmatpush.bf16.msra.mxu1 %v603_v11 }
  0x2d   : > { %304 = vmatpush.bf16.msra.mxu1 %v602_v12 }
  0x95   : > { %v225_v13 = vpop.f32.mrf.mxu0 }
  0x96   : > { %v230_v15 = vmax.f32 %v225_v13, 0.0 }
  0x9d   : > { %v227_v14 = vpop.f32.mrf.mxu0 }
  0x9e   : > { %v231_v16 = vmax.f32 %v227_v14, 0.0 }
  0xa0   : > { %v232_v17 = vpack.c.bf16 %v231_v16, %v230_v15 }
  0xa2   : > { %305 = vmatmul.bf16.vlgmr.msra.gmra.mxu1 %v232_v17 }
 0x11f   : > { %v306_v18 = vpop.f32.mrf.mxu1 }
 0x120   : > { %v311_v19 = vmax.f32 %v306_v18, 0.0 }
 0x122   : > { %313 = vst.msk [vmem:[%s878_s29] sm:$0xff] %vm212_vm0, %v311_v19 }
 0x126   : > { %321 = sbr.rel (!%p834_p4) target bundleno = 338 (0x152), region = 36 }
 0x127   : > { %v308_v20 = vpop.f32.mrf.mxu1 }
 0x128   : > { %v312_v21 = vmax.f32 %v308_v20, 0.0 }
 0x12a   : > { %314 = vst.msk [vmem:[%s878_s29 + $0x8] sm:$0xff] %vm212_vm0, %v312_v21 }
 0x12b   : > { %s934_s30 = smov (!%p324_p8, %s323_s30), 2 }
 0x12c   : > { %s585_s7 = sshll.u32 %s934_s30, 3 }
 0x12d   : > { %p588_p9 = scmp.eq.s32.totalorder %s585_s7, 0 }
 0x12e   : > { %s897_s8 = sshrl.u32 (!%p588_p9), %s934_s30, 1 }
 0x12f   : > { %332 = sbr.rel (%p588_p9) target bundleno = 338 (0x152), region = 40  ;;  %p589_p10 = scmp.le.s32.totalorder (!%p588_p9), %s897_s8, 0 }
 0x134   : > { %491 = sbr.rel (%p589_p10) target bundleno = 321 (0x141), region = 116  ;;  %s757_s15 = smov (!%p589_p10), %s891_s6  }
 0x135   : > { %s761_s20 = smov (!%p589_p10), %s878_s29   ;;  %s765_s23 = smov (!%p589_p10), 0  }
 0x136   : > { %s769_s9 = smov (!%p589_p10), 0  }
 0x139 LB: >> { %v397_v22 = vld [vmem:[%s763_s20] sm:$0xff]  ;;  %v399_v23 = vld [vmem:[%s763_s20 + $0x8] sm:$0xff]  ;;  %s401_s10 = sadd.s32 1, %s767_s23  ;;  %s391_s9 = sadd.s32 1, %s771_s9   ;;  %s771_s9 = sphi %s769_s9, %s391_s9   ;;  %s767_s23 = sphi %s765_s23, %s766_s23   ;;  %s763_s20 = sphi %s761_s20, %s406_s20   ;;  %s759_s15 = sphi %s757_s15, %s407_s15  }
 0x13a   : >> { %398 = vst [vmem:[%s759_s15] sm:$0xff] %v397_v22  ;;  %p402_p11 = scmp.ge.s32.totalorder %s401_s10, %s897_s8  ;;  %p390_p12 = scmp.ge.s32.totalorder %s391_s9, %s897_s8 }
 0x13b   : >> { %400 = vst [vmem:[%s759_s15 + $0x8] sm:$0xff] %v399_v23 }
 0x13c   : >> { %s936_s10 = smov (%p402_p11, %s401_s10), 0  ;;  %393 = sbr.rel (!%p390_p12) target bundleno = 313 (0x139), region = 122 }
 0x13d   : >> { %s590_s11 = sshll.u32 %s936_s10, 4  ;;  %s766_s23 = smov %s936_s10  }
 0x13e   : >> { %s406_s20 = scalar_lea.vmem %s878_s29, %s590_s11 [#allocation2]   ;;  %s407_s15 = scalar_lea.vmem %s891_s6, %s590_s11  }
 0x141 PF: > { %s907_s14 = sand.u32 1, %s934_s30   ;;  %s611_s17 = sshll.u32 %s897_s8, 4 }
 0x142   : > { %s412_s18 = scalar_lea.vmem %s878_s29, %s611_s17 [#allocation2]   ;;  %s414_s21 = scalar_lea.vmem %s891_s6, %s611_s17  }
 0x143   : > { %p595_p13 = scmp.le.s32.totalorder %s907_s14, 0 }
 0x144   : > { %s773_s22 = smov (!%p595_p13), %s414_s21   ;;  %s777_s24 = smov (!%p595_p13), %s412_s18  }
 0x145   : > { %505 = sbr.rel (%p595_p13) target bundleno = 338 (0x152), region = 127  ;;  %s781_s25 = smov (!%p595_p13), 0  }
 0x146   : > { %s785_s26 = smov (!%p595_p13), 0  }
 0x14a LB: >> { %v424_v24 = vld [vmem:[%s779_s24] sm:$0xff]  ;;  %s426_s27 = sadd.s32 1, %s783_s25  ;;  %s418_s26 = sadd.s32 1, %s787_s26   ;;  %s787_s26 = sphi %s785_s26, %s418_s26   ;;  %s783_s25 = sphi %s781_s25, %s782_s25   ;;  %s779_s24 = sphi %s777_s24, %s431_s24   ;;  %s775_s22 = sphi %s773_s22, %s432_s22  }
 0x14b   : >> { %425 = vst [vmem:[%s775_s22] sm:$0xff] %v424_v24  ;;  %p427_p0 = scmp.ge.s32.totalorder %s426_s27, %s907_s14  ;;  %p417_p1 = scmp.ge.s32.totalorder %s418_s26, %s907_s14 }
 0x14d   : >> { %s938_s27 = smov (%p427_p0, %s426_s27), 0  ;;  %420 = sbr.rel (!%p417_p1) target bundleno = 330 (0x14a), region = 133 }
 0x14e   : >> { %s596_s28 = sshll.u32 %s938_s27, 3  ;;  %s782_s25 = smov %s938_s27  }
 0x14f   : >> { %s431_s24 = scalar_lea.vmem %s412_s18, %s596_s28 [#allocation2]   ;;  %s432_s22 = scalar_lea.vmem %s414_s21, %s596_s28  }
 0x152 PF: > { %p10_p2 = scmp.ge.s32.totalorder %s824_s16, 4   ;;  %s930_s12 = smov %s751_s13 }
 0x153   : > { %s931_s13 = smov %s832_s19  ;;  %s932_s14 = smov %s824_s16 }
 0x154   :  { %12 = sbr.rel (!%p10_p2) target bundleno = 2 (0x2), region = 144 }

</bundles_post_ra>
